<compile_context>
chip_gen: v7x
topology: tpu7x:2x2x1
jax: 0.10.0
libtpu: 0.0.40
codegen_flags: <defaults>
</compile_context>

<pallas_src>
import functools

import jax
import jax.numpy as jnp
from jax.experimental import pallas as pl
from jax.experimental.pallas import tpu as pltpu


# ---------------- conv matmul (+bias, +ReLU, +fused avg-pool) kernels ---------
def _mm_single_k_kernel(p_ref, w_ref, b_ref, o_ref, *psum, relu, pool):
    # p_ref: (tm, K) bf16   w_ref: (K, tn) bf16   b_ref: (1, tn) f32
    # o_ref: (tm, tn) bf16  psum[0]: (1, 1, tn) f32 per-M-tile column sums
    y = jnp.dot(p_ref[...], w_ref[...], preferred_element_type=jnp.float32)
    y = y + b_ref[...]
    if relu:
        y = jnp.maximum(y, 0.0)
    o_ref[...] = y.astype(o_ref.dtype)
    if pool:
        psum[0][...] = jnp.sum(y, axis=0, keepdims=True)[None]


def _mm_multi_k_kernel(p_ref, w_ref, b_ref, o_ref, *rest, relu, pool):
    if pool:
        psum_ref, acc_ref = rest
    else:
        (acc_ref,) = rest
    k = pl.program_id(2)

    @pl.when(k == 0)
    def _():
        acc_ref[...] = jnp.zeros_like(acc_ref)

    acc_ref[...] += jnp.dot(p_ref[...], w_ref[...],
                            preferred_element_type=jnp.float32)

    @pl.when(k == pl.num_programs(2) - 1)
    def _():
        y = acc_ref[...] + b_ref[...]
        if relu:
            y = jnp.maximum(y, 0.0)
        o_ref[...] = y.astype(o_ref.dtype)
        if pool:
            psum_ref[...] = jnp.sum(y, axis=0, keepdims=True)[None]


def _pick_tm(M, OHW):
    """Pick the M tile.

    Prefer tiles that (a) evenly divide the per-sample spatial size so fused
    average-pool partial sums never mix samples or garbage tail rows, and
    (b) give >= 2 M tiles so the 'parallel' M axis can be split across both
    v7x TensorCores. Returns (tm, pool_fused)."""
    for cand in (2048, 1024, 512, 256, 128):
        if OHW % cand == 0 and M > cand:
            return cand, True
    if OHW <= 2048 and (OHW % 8 == 0 or M == OHW):
        return OHW, True
    return min(M, 1024), False


def _fused_conv_matmul(patches, w2d, bias, *, relu, OHW,
                       k_full_max=1024, tk_tile=1024):
    """(M, K) bf16 @ (K, Coutp) bf16 + bias (f32), optional ReLU.

    Returns (out (M, Coutp) bf16, psum) where psum is (m_tiles, 1, Coutp) f32
    per-M-tile column sums (for the fused global average pool), or None when
    the pool could not be fused (tm does not evenly tile OHW)."""
    M, K = patches.shape
    _, Coutp = w2d.shape
    assert Coutp % 128 == 0

    tn = 256 if Coutp % 256 == 0 else 128      # feed the full 256-wide MXU when possible
    tm, pool = _pick_tm(M, OHW)
    m_tiles = pl.cdiv(M, tm)

    out_shapes = [jax.ShapeDtypeStruct((M, Coutp), jnp.bfloat16)]

    if K <= k_full_max:
        # Single K step: no accumulator scratch, no pl.when round trips.
        grid = (m_tiles, Coutp // tn)
        in_specs = [
            pl.BlockSpec((tm, K), lambda i, j: (i, 0)),
            pl.BlockSpec((K, tn), lambda i, j: (0, j)),
            pl.BlockSpec((1, tn), lambda i, j: (0, j)),
        ]
        out_specs = [pl.BlockSpec((tm, tn), lambda i, j: (i, j))]
        if pool:
            out_shapes.append(jax.ShapeDtypeStruct((m_tiles, 1, Coutp), jnp.float32))
            out_specs.append(pl.BlockSpec((1, 1, tn), lambda i, j: (i, 0, j)))
        scratch = []
        kernel = functools.partial(_mm_single_k_kernel, relu=relu, pool=pool)
        semantics = ("parallel", "parallel")
    else:
        tk = tk_tile
        Kp = pl.cdiv(K, tk) * tk
        if Kp != K:
            patches = jnp.pad(patches, ((0, 0), (0, Kp - K)))
            w2d = jnp.pad(w2d, ((0, Kp - K), (0, 0)))
        grid = (m_tiles, Coutp // tn, Kp // tk)
        in_specs = [
            pl.BlockSpec((tm, tk), lambda i, j, k: (i, k)),
            pl.BlockSpec((tk, tn), lambda i, j, k: (k, j)),
            pl.BlockSpec((1, tn), lambda i, j, k: (0, j)),
        ]
        out_specs = [pl.BlockSpec((tm, tn), lambda i, j, k: (i, j))]
        if pool:
            out_shapes.append(jax.ShapeDtypeStruct((m_tiles, 1, Coutp), jnp.float32))
            out_specs.append(pl.BlockSpec((1, 1, tn), lambda i, j, k: (i, 0, j)))
        scratch = [pltpu.VMEM((tm, tn), jnp.float32)]
        kernel = functools.partial(_mm_multi_k_kernel, relu=relu, pool=pool)
        semantics = ("parallel", "parallel", "arbitrary")

    res = pl.pallas_call(
        kernel,
        out_shape=out_shapes,
        grid_spec=pltpu.PrefetchScalarGridSpec(
            num_scalar_prefetch=0,
            grid=grid,
            in_specs=in_specs,
            out_specs=out_specs,
            scratch_shapes=scratch,
        ),
        compiler_params=pltpu.CompilerParams(
            dimension_semantics=semantics,
            vmem_limit_bytes=32 * 1024 * 1024,
        ),
    )(patches, w2d, bias)
    return res[0], (res[1] if pool else None)


# ------------- SE 1x1 conv + sigmoid + channel-gating (one kernel) ------------
def _stable_sigmoid(se):
    z = jnp.exp(-jnp.abs(se))
    r = pl.reciprocal(1.0 + z, approx=True)     # EUP; exact enough for gating
    return jnp.where(se >= 0.0, r, z * r)


def _gate_nchw_kernel(fm_ref, pooled_ref, w1_ref, b1_ref, o_ref, *, cout):
    # fm_ref: (1, ts, Coutp) bf16   pooled_ref: (1, 1, Coutp) f32
    # w1_ref: (Coutp, Coutp) f32    b1_ref: (1, Coutp) f32
    # o_ref:  (1, cout, ts) f32  -- NCHW slab, only valid channels written.
    se = jnp.dot(pooled_ref[0], w1_ref[...],
                 preferred_element_type=jnp.float32) + b1_ref[...]
    gate = _stable_sigmoid(se)                               # (1, Coutp)
    y = fm_ref[0].astype(jnp.float32) * gate                 # (ts, Coutp)
    yt = jnp.transpose(y, (1, 0))                            # (Coutp, ts) on the XLU
    o_ref[...] = yt[:cout, :][None]


def _gate_nhwc_kernel(fm_ref, pooled_ref, w1_ref, b1_ref, o_ref):
    # Fallback layout (N, ts, Coutp): gate only; slice/transpose done by XLA.
    se = jnp.dot(pooled_ref[0], w1_ref[...],
                 preferred_element_type=jnp.float32) + b1_ref[...]
    gate = _stable_sigmoid(se)
    o_ref[...] = fm_ref[...].astype(jnp.float32) * gate


def _channel_gate(fm3, pooled3, w1p, b1p, *, cout):
    """out[n, c, s] = fm3[n, s, c] * sigmoid((pooled3[n] @ w1p + b1p)[c]), c < cout."""
    N, OHW, Coutp = fm3.shape
    common_in_specs = [
        pl.BlockSpec((1, 1, Coutp), lambda n, s: (n, 0, 0)),
        pl.BlockSpec((Coutp, Coutp), lambda n, s: (0, 0)),
        pl.BlockSpec((1, Coutp), lambda n, s: (0, 0)),
    ]
    if OHW % 128 == 0:
        ts = next(c for c in (1024, 512, 256, 128) if OHW % c == 0)
        return pl.pallas_call(
            functools.partial(_gate_nchw_kernel, cout=cout),
            out_shape=jax.ShapeDtypeStruct((N, cout, OHW), jnp.float32),
            grid_spec=pltpu.PrefetchScalarGridSpec(
                num_scalar_prefetch=0,
                grid=(N, OHW // ts),
                in_specs=[pl.BlockSpec((1, ts, Coutp), lambda n, s: (n, s, 0))]
                         + common_in_specs,
                out_specs=pl.BlockSpec((1, cout, ts), lambda n, s: (n, 0, s)),
            ),
            compiler_params=pltpu.CompilerParams(
                dimension_semantics=("parallel", "parallel"),
                vmem_limit_bytes=32 * 1024 * 1024,
            ),
        )(fm3, pooled3, w1p, b1p)                                 # (N, cout, OHW)

    # Awkward spatial sizes: gate in (N, OHW, Coutp) layout, finish in XLA.
    ts = min(OHW, 1024)
    out = pl.pallas_call(
        _gate_nhwc_kernel,
        out_shape=jax.ShapeDtypeStruct((N, OHW, Coutp), jnp.float32),
        grid_spec=pltpu.PrefetchScalarGridSpec(
            num_scalar_prefetch=0,
            grid=(N, pl.cdiv(OHW, ts)),
            in_specs=[pl.BlockSpec((1, ts, Coutp), lambda n, s: (n, s, 0))]
                     + common_in_specs,
            out_specs=pl.BlockSpec((1, ts, Coutp), lambda n, s: (n, s, 0)),
        ),
        compiler_params=pltpu.CompilerParams(
            dimension_semantics=("parallel", "parallel"),
            vmem_limit_bytes=32 * 1024 * 1024,
        ),
    )(fm3, pooled3, w1p, b1p)
    return jnp.transpose(out[:, :, :cout], (0, 2, 1))             # (N, cout, OHW)


# ------------------------------- JAX glue ------------------------------------
def _im2col(x, kh, kw, stride, pad, dilation):
    # x: (N, C, H, W) -> patches: (N*OH*OW, C*kh*kw), K ordered (C, kh, kw).
    # TODO(synk): eliminate the materialized im2col (kh*kw shifted accumulating
    # matmuls from an NHWC copy inside the conv kernel).
    N, C, H, W = x.shape
    x_pad = jnp.pad(x, ((0, 0), (0, 0), (pad, pad), (pad, pad)))
    OH = (H + 2 * pad - dilation * (kh - 1) - 1) // stride + 1
    OW = (W + 2 * pad - dilation * (kw - 1) - 1) // stride + 1
    cols = []
    for ki in range(kh):
        for kj in range(kw):
            i0, j0 = ki * dilation, kj * dilation
            cols.append(x_pad[:, :, i0:i0 + (OH - 1) * stride + 1:stride,
                                    j0:j0 + (OW - 1) * stride + 1:stride])
    patches = jnp.stack(cols, axis=0)                    # (kh*kw, N, C, OH, OW)
    patches = jnp.transpose(patches, (1, 3, 4, 2, 0))    # (N, OH, OW, C, kh*kw)
    return patches.reshape(N * OH * OW, C * kh * kw), OH, OW


def _fold_bn(weight2d, gamma, beta, mean, var, eps):
    # weight2d: (K, Cout). Fold eval-mode BN scale into weights, return bias.
    scale = gamma / jnp.sqrt(var + eps)
    return weight2d * scale[None, :], beta - mean * scale


def attention_refinement(x, w3, g3, b3, m3, v3, w1, g1, b1, m1, v1, *,
                         bn_eps=1e-5):
    """AttentionRefinement forward. x: (N, Cin, H, W) f32 -> (N, Cout, H, W) f32."""
    # TODO(synk): groups != 1 / training-mode BN stats not implemented
    # (module defaults are groups=1, eval-mode BN).
    N, Cin, H, W = x.shape
    Cout = w3.shape[0]
    Coutp = ((Cout + 127) // 128) * 128
    K = Cin * 9

    # ---- conv_3x3: ConvBnRelu(3, stride 1, pad 1) + fused global average pool
    patches, OH, OW = _im2col(x.astype(jnp.bfloat16), 3, 3, 1, 1, 1)
    OHW = OH * OW
    w3_2d, bias3 = _fold_bn(w3.reshape(Cout, K).T.astype(jnp.float32),
                            g3, b3, m3, v3, bn_eps)
    w3_2d = jnp.pad(w3_2d, ((0, 0), (0, Coutp - Cout))).astype(jnp.bfloat16)
    bias3 = jnp.pad(bias3, ((0, Coutp - Cout),)).reshape(1, Coutp).astype(jnp.float32)

    fm2d, psum = _fused_conv_matmul(patches, w3_2d, bias3, relu=True, OHW=OHW)
    fm3 = fm2d.reshape(N, OHW, Coutp)                                 # bf16

    if psum is not None:                                              # fused pool
        pooled = psum.reshape(N, -1, Coutp).sum(axis=1) / float(OHW)  # (N, Coutp)
    else:                                                             # fallback
        pooled = jnp.mean(fm3.astype(jnp.float32), axis=1)
    pooled3 = pooled.reshape(N, 1, Coutp)

    # ---- channel_attention: 1x1 ConvBn (no ReLU) + sigmoid + gating, one kernel
    w1_2d, bias1 = _fold_bn(w1.reshape(Cout, Cout).T.astype(jnp.float32),
                            g1, b1, m1, v1, bn_eps)
    w1p = jnp.pad(w1_2d, ((0, Coutp - Cout), (0, Coutp - Cout))).astype(jnp.float32)
    b1p = jnp.pad(bias1, ((0, Coutp - Cout),)).reshape(1, Coutp).astype(jnp.float32)

    out = _channel_gate(fm3, pooled3, w1p, b1p, cout=Cout)            # (N, Cout, OHW)
    return out.reshape(N, Cout, OH, OW)


# ------------------------------- reference -----------------------------------
def _reference(x, w3, g3, b3, m3, v3, w1, g1, b1, m1, v1, bn_eps):
    def cbr(x, w, g, b, m, v, stride, pad, relu):
        y = jax.lax.conv_general_dilated(
            x, w, window_strides=(stride, stride),
            padding=((pad, pad), (pad, pad)),
            dimension_numbers=("NCHW", "OIHW", "NCHW"))
        s = g / jnp.sqrt(v + bn_eps)
        y = y * s[None, :, None, None] + (b - m * s)[None, :, None, None]
        return jnp.maximum(y, 0.0) if relu else y

    fm = cbr(x, w3, g3, b3, m3, v3, 1, 1, True)
    pooled = jnp.mean(fm, axis=(2, 3), keepdims=True)
    se = jax.nn.sigmoid(cbr(pooled, w1, g1, b1, m1, v1, 1, 0, False))
    return fm * se


# --------------------------------- main ---------------------------------------
if __name__ == "__main__":
    key = jax.random.PRNGKey(0)
    keys = jax.random.split(key, 12)

    # AttentionRefinement(in_planes=4, out_planes=8) on a (2, 4, 16, 16) input.
    N, Cin, H, W = 2, 4, 16, 16
    Cout = 8
    bn_eps = 1e-5

    x = jax.random.normal(keys[0], (N, Cin, H, W), jnp.float32)

    w3 = 0.1 * jax.random.normal(keys[1], (Cout, Cin, 3, 3), jnp.float32)
    g3 = 1.0 + 0.1 * jax.random.normal(keys[2], (Cout,), jnp.float32)
    b3 = 0.1 * jax.random.normal(keys[3], (Cout,), jnp.float32)
    m3 = 0.1 * jax.random.normal(keys[4], (Cout,), jnp.float32)
    v3 = jnp.abs(1.0 + 0.1 * jax.random.normal(keys[5], (Cout,), jnp.float32))

    w1 = 0.1 * jax.random.normal(keys[6], (Cout, Cout, 1, 1), jnp.float32)
    g1 = 1.0 + 0.1 * jax.random.normal(keys[7], (Cout,), jnp.float32)
    b1 = 0.1 * jax.random.normal(keys[8], (Cout,), jnp.float32)
    m1 = 0.1 * jax.random.normal(keys[9], (Cout,), jnp.float32)
    v1 = jnp.abs(1.0 + 0.1 * jax.random.normal(keys[10], (Cout,), jnp.float32))

    out = attention_refinement(x, w3, g3, b3, m3, v3, w1, g1, b1, m1, v1,
                               bn_eps=bn_eps)
    out = jax.block_until_ready(out)

    ref = _reference(x, w3, g3, b3, m3, v3, w1, g1, b1, m1, v1, bn_eps)

    assert out.shape == (N, Cout, H, W), out.shape
    err = float(jnp.max(jnp.abs(out - ref)))
    # bf16 MXU operands / bf16 fm intermediate with f32 accumulation.
    assert jnp.allclose(out, ref, atol=5e-2, rtol=5e-2), err
    print("KERNEL_OK")
</pallas_src>

<mosaic_0001>
module attributes {stable_mosaic.version = 11 : i64} {
  func.func @_mm_single_k_kernel(%arg0: i32, %arg1: i32, %arg2: memref<256x36xbf16, #tpu.memory_space<vmem>>, %arg3: memref<36x128xbf16, #tpu.memory_space<vmem>>, %arg4: memref<1x128xf32, #tpu.memory_space<vmem>>, %arg5: memref<256x128xbf16, #tpu.memory_space<vmem>>, %arg6: memref<1x1x128xf32, #tpu.memory_space<vmem>>) attributes {dimension_semantics = [#tpu.dimension_semantics<parallel>, #tpu.dimension_semantics<parallel>], iteration_bounds = array<i64: 2, 1>, scalar_prefetch = 0 : i64, scratch_operands = 0 : i64, tpu.core_type = #tpu.core_type<tc>, window_params = [{transform_indices = @transform_0, window_bounds = array<i64: 256, 36>}, {transform_indices = @transform_1, window_bounds = array<i64: 36, 128>}, {transform_indices = @transform_2, window_bounds = array<i64: 1, 128>}, {transform_indices = @transform_3, window_bounds = array<i64: 256, 128>}, {transform_indices = @transform_4, window_bounds = array<i64: 1, 1, 128>}]} {
    %c0 = arith.constant 0 : index
    %c0_0 = arith.constant 0 : index
    %0 = vector.load %arg2[%c0, %c0_0] : memref<256x36xbf16, #tpu.memory_space<vmem>>, vector<256x36xbf16>
    %c0_1 = arith.constant 0 : index
    %c0_2 = arith.constant 0 : index
    %1 = vector.load %arg3[%c0_1, %c0_2] : memref<36x128xbf16, #tpu.memory_space<vmem>>, vector<36x128xbf16>
    %cst = arith.constant dense<0.000000e+00> : vector<256x128xf32>
    %2 = tpu.matmul %0, %1, %cst {dimension_numbers = #tpu.dot_dimension_numbers<[1], [0], [0], [1], [0, 0, 1, 1], [], []>} : vector<256x36xbf16>, vector<36x128xbf16>, vector<256x128xf32> -> vector<256x128xf32>
    %c0_3 = arith.constant 0 : index
    %c0_4 = arith.constant 0 : index
    %3 = vector.load %arg4[%c0_3, %c0_4] : memref<1x128xf32, #tpu.memory_space<vmem>>, vector<1x128xf32>
    %4 = vector.broadcast %3 : vector<1x128xf32> to vector<256x128xf32>
    %5 = arith.addf %2, %4 : vector<256x128xf32>
    %cst_5 = arith.constant 0.000000e+00 : f32
    %6 = vector.broadcast %cst_5 : f32 to vector<256x128xf32>
    %7 = arith.maximumf %5, %6 : vector<256x128xf32>
    %8 = arith.truncf %7 : vector<256x128xf32> to vector<256x128xbf16>
    %c0_6 = arith.constant 0 : index
    %c0_7 = arith.constant 0 : index
    %9 = vector.load %arg5[%c0_6, %c0_7] : memref<256x128xbf16, #tpu.memory_space<vmem>>, vector<256x128xbf16>
    tpu.vector_store %arg5[%c0_6, %c0_7], %8 {strides = array<i32>} : memref<256x128xbf16, #tpu.memory_space<vmem>>, vector<256x128xbf16>,
    %cst_8 = arith.constant dense<0.000000e+00> : vector<128xf32>
    %10 = vector.multi_reduction <add>, %7, %cst_8 [0] : vector<256x128xf32> to vector<128xf32>
    %11 = vector.shape_cast %10 : vector<128xf32> to vector<1x128xf32>
    %12 = vector.shape_cast %11 : vector<1x128xf32> to vector<1x1x128xf32>
    %c0_9 = arith.constant 0 : index
    %c0_10 = arith.constant 0 : index
    %c0_11 = arith.constant 0 : index
    %13 = vector.load %arg6[%c0_9, %c0_10, %c0_11] : memref<1x1x128xf32, #tpu.memory_space<vmem>>, vector<1x1x128xf32>
    tpu.vector_store %arg6[%c0_9, %c0_10, %c0_11], %12 {strides = array<i32>} : memref<1x1x128xf32, #tpu.memory_space<vmem>>, vector<1x1x128xf32>,
    return
  }
  func.func @transform_0(%arg0: i32, %arg1: i32) -> (i32, i32) {
    %c0_i32 = arith.constant 0 : i32
    %c0_i32_0 = arith.constant 0 : i32
    return %arg0, %c0_i32 : i32, i32
  }
  func.func @transform_1(%arg0: i32, %arg1: i32) -> (i32, i32) {
    %c0_i32 = arith.constant 0 : i32
    %c0_i32_0 = arith.constant 0 : i32
    return %c0_i32, %arg1 : i32, i32
  }
  func.func @transform_2(%arg0: i32, %arg1: i32) -> (i32, i32) {
    %c0_i32 = arith.constant 0 : i32
    %c0_i32_0 = arith.constant 0 : i32
    return %c0_i32, %arg1 : i32, i32
  }
  func.func @transform_3(%arg0: i32, %arg1: i32) -> (i32, i32) {
    %c0_i32 = arith.constant 0 : i32
    return %arg0, %arg1 : i32, i32
  }
  func.func @transform_4(%arg0: i32, %arg1: i32) -> (i32, i32, i32) {
    %c0_i32 = arith.constant 0 : i32
    %c0_i32_0 = arith.constant 0 : i32
    return %arg0, %c0_i32, %arg1 : i32, i32, i32
  }
}

</mosaic_0001>

<bundles_post_ra>
// kernel: tpu_custom_call.1
= control target key start
LH: loop header
LB: loop body
LE: loop exit
PB: predicated region body
PF: predicated region fallthrough
CT: control target
= control target key end

     0   :  { %10 = vsyncpa [#allocation3], 0  ;;  %s1840_s0 = inlined_call_operand.vmem [shape: bf16[512,36], index: 0, kind: input, shape index: {}]   ;;  %s1841_s1 = inlined_call_operand.vmem [shape: bf16[36,128], index: 1, kind: input, shape index: {}]   ;;  %s1842_s2 = inlined_call_operand.vmem [shape: f32[1,128], index: 2, kind: input, shape index: {}]   ;;  %s1843_s3 = inlined_call_operand.hbm [shape: bf16[512,128], index: 3, kind: output, shape index: {0}]   ;;  %s1844_s4 = inlined_call_operand.hbm [shape: f32[2,1,128], index: 4, kind: output, shape index: {1}]  }
   0x1   :  { %12 = vsyncpa [#allocation3 + $0x1], 0 }
   0x2   :  { %13 = vsyncpa [#allocation5], 0 }
   0x3   :  { %15 = vsyncpa [#allocation5 + $0x1], 0  ;;  %s1500_s15 = smov 0   ;;  %s1502_s16 = smov 0  }
   0x4   :  { %s1504_s17 = smov 0   ;;  %s1506_s18 = smov 0  }
   0x5   :  { %s1508_s19 = smov 0   ;;  %s1510_s20 = smov 0  }
   0x6 LB: > { %s1001_s21 = sadd.s32 4294967295, %s1469_s20   ;;  %s1002_s22 = sadd.s32 4294967294, %s1469_s20   ;;  %s1469_s20 = sphi %s1510_s20, %s21_s20   ;;  %s1465_s19 = sphi %s1508_s19, %s1851_s19   ;;  %s1461_s18 = sphi %s1506_s18, %s1850_s18   ;;  %s1457_s17 = sphi %s1504_s17, %s1849_s17   ;;  %s1453_s16 = sphi %s1502_s16, %s1848_s16   ;;  %s1449_s15 = sphi %s1500_s15, %s1847_s15  }
   0x7   : > { %s33_s23 = sadd.s32 1, %s1465_s19  ;;  %s120_s24 = sadd.s32 1, %s1457_s17 }
   0x8   : > { %p35_p0 = scmp.ge.s32.totalorder %s33_s23, 2  ;;  %p130_p1 = scmp.ne.s32.totalorder %s1457_s17, %s1453_s16 }
   0x9   : > { %p131_p2 = scmp.eq.s32.totalorder %s1001_s21, 1  ;;  %p136_p3 = scmp.ne.s32.totalorder %s1453_s16, %s1449_s15 }
   0xa   : > { %s1853_s23 = smov (%p35_p0, %s33_s23), 0  ;;  %p137_p5 = scmp.eq.s32.totalorder %s1002_s22, 1 }
   0xb   : > { %p1540_p4 = por %p131_p2, %p130_p1  ;;  %s115_s26 = ssub.s32 %s1465_s19, %s1853_s23 }
   0xc   : > { %p1007_p6 = scmp.ge.s32.totalorder %s1469_s20, 1  ;;  %p118_p7 = scmp.eq.s32.totalorder %s115_s26, 0 }
   0xd   : > { %p1547_p8 = por %p137_p5, %p136_p3  ;;  %p205_p9 = scmp.lt.s32.totalorder %s1469_s20, 3 }
   0xe   : > { %s1553_s28 = scalar_select %p118_p7, %s1457_s17, %s120_s24  }
   0xf   : > { %p206_p10 = pnand %p1007_p6, %p205_p9 }
  0x10   : > { %v1340_v0 = vld [vmem:[%s1841_s1] sm:$0xff] (!%p206_p10)   ;;  %v1341_v1 = vld [vmem:[%s1841_s1 + $0x8] sm:$0xff] (!%p206_p10)   ;;  %s1009_s7 = sshll.u32 (!%p206_p10), %s1461_s18, 5  ;;  %v1342_v2 = vld [vmem:[%s1841_s1 + $0x10] ss:$0 sps:$4 sm:$0x33] (!%p206_p10)  }
  0x11   : > { %209 = sbr.rel (%p206_p10) target bundleno = 347 (0x15b), region = 32  ;;  %1232 = vmatprep.subr.bf16.mxu0 (!%p206_p10), %v1340_v0  ;;  %p243_p11 = scmp.lt.s32.totalorder (!%p206_p10), %s1009_s7, 63  ;;  %1270 = vmatprep.subr.bf16.mxu1 (!%p206_p10), %v1340_v0  ;;  %vm445_vm0 = vcmask (!%p206_p10), 1041408   ;;  %vm396_vm1 = vcmask (!%p206_p10), 293888   ;;  %v1605_v20 = vld [vmem:[%s1842_s2] ss:$0 sm:$0xff] (!%p206_p10) }
  0x12   : > { %1233 = vmatpush3.bf16.msra.mxu0 (!%p206_p10), %v1340_v0  ;;  %1273 = vmatpush3.bf16.msra.mxu1 (!%p206_p10), %v1340_v0  ;;  %v447_v3 = vsel (!%p206_p10), %vm445_vm0, %v1342_v2, 0  ;;  %s1608_s22 = sand.u32 (!%p206_p10), 1, %s1453_s16   ;;  %s1117_s29 = sshll.u32 (!%p206_p10), %s1461_s18, 11 }
  0x13   : > { %1234 = vmatprep.subr.bf16.mxu0 (!%p206_p10), %v1341_v1  ;;  %1271 = vmatprep.subr.bf16.mxu1 (!%p206_p10), %v1341_v1  ;;  %s1008_s24 = sshll.u32 (!%p206_p10), %s1608_s22, 7  ;;  %s841_s8 = scalar_lea.sflag (!%p206_p10), [#allocation3], %s1608_s22 }
  0x14   : > { %s1625_s26 = scalar_lea.vmem (!%p206_p10), [#allocation2], %s1008_s24 }
  0x15   : > { %s859_s30 = sshll.u32 (!%p206_p10), %s1625_s26, 4  ;;  %s1735_s30 = int_to_ptr.vmem [resolvable:$true] %s859_s30 }
  0x16   : > { %1235 = vmatpush3.bf16.msra.mxu0 (!%p206_p10), %v1341_v1  ;;  %1274 = vmatpush3.bf16.msra.mxu1 (!%p206_p10), %v1341_v1  ;;  %s1359_s9 = scalar_lea.vmem (!%p206_p10), %s1735_s30, 2048 }
  0x17   : > { %1276 = vmatprep.subr.msk.bf16.mxu0 (!%p206_p10), %vm445_vm0, %v1342_v2  ;;  %1277 = vmatprep.subr.msk.bf16.mxu1 (!%p206_p10), %vm445_vm0, %v1342_v2  ;;  %p1360_p12 = scmp.ne.s32.totalorder (!%p206_p10), %s1735_s30, %s1359_s9 }
  0x18   : > { %s1855_s7 = smov (!%p243_p11, %s1009_s7), 63 }
  0x19   : > { %s1010_s10 = sshll.u32 %s1855_s7, 2  ;;  %s1733_s7 = scalar_lea.hbm %s1843_s3, %s1117_s29 }
  0x1a   : > { %s1568_s13 = scalar_lea.vmem %s1840_s0, %s1010_s10  ;;  %1237 = vmatpush3.bf16.msra.mxu0 %v447_v3  ;;  %1275 = vmatpush3.bf16.msra.mxu1 %v447_v3  ;;  %p1361_p13 = pnand %p1360_p12, %p1540_p4 }
  0x1b   : > { %v1343_v4 = vld [vmem:[%s1568_s13] sm:$0xff]   ;;  %v1344_v5 = vld [vmem:[%s1568_s13 + $0x8] sm:$0xff]   ;;  %v1345_v6 = vld [vmem:[%s1568_s13 + $0x10] sm:$0xff]   ;;  %s1471_s10 = smov [#allocation2]  }
  0x1c   : > { %1238 = vmatprep.mubr.msk.bf16.mxu0 %vm396_vm1, %v1343_v4  ;;  %v1346_v7 = vld [vmem:[%s1568_s13 + $0x18] sm:$0xff]   ;;  %v1351_v8 = vld [vmem:[%s1568_s13 + $0x40] sm:$0xff]   ;;  %v1352_v9 = vld [vmem:[%s1568_s13 + $0x48] sm:$0xff]   ;;  %p1362_p0 = pneg %p1361_p13  ;;  %s1363_s11 = sshll.u32 %s1471_s10, 4  ;;  %s1364_s11 = int_to_ptr.vmem [resolvable:$false] %s1363_s11 }
  0x1d   : > { %1239 = vmatmul.mubr.msk.bf16.vlgmr.msra.gmra.mrb[0].mxu0 %vm396_vm1, %v1344_v5  ;;  %1254 = vmatprep.mubr.msk.bf16.mxu1 %vm396_vm1, %v1351_v8  ;;  %v1353_v10 = vld [vmem:[%s1568_s13 + $0x50] sm:$0xff]   ;;  %v1347_v11 = vld [vmem:[%s1568_s13 + $0x20] sm:$0xff]   ;;  %v1354_v12 = vld [vmem:[%s1568_s13 + $0x58] sm:$0xff]   ;;  %s1365_s12 = scalar_lea.vmem %s1364_s11, 4096  ;;  %p1366_p1 = scmp.lt.s32.totalorder %s1735_s30, %s1364_s11 }
  0x1e   : > { %1242 = vmatprep.mubr.msk.bf16.mxu0 %vm396_vm1, %v1345_v6  ;;  %1255 = vmatmul.mubr.msk.bf16.vlgmr.msra.gmra.mrb[0].mxu1 %vm396_vm1, %v1352_v9  ;;  %v1355_v13 = vld [vmem:[%s1568_s13 + $0x60] sm:$0xff]   ;;  %v1348_v14 = vld [vmem:[%s1568_s13 + $0x28] sm:$0xff]   ;;  %v1349_v15 = vld [vmem:[%s1568_s13 + $0x30] sm:$0xff]   ;;  %p1367_p2 = scmp.lt.s32.totalorder %s1365_s12, %s1359_s9 }
  0x1f   : > { %1258 = vmatprep.mubr.msk.bf16.mxu1 %vm396_vm1, %v1353_v10  ;;  %v1356_v16 = vld [vmem:[%s1568_s13 + $0x68] sm:$0xff]   ;;  %v1357_v17 = vld [vmem:[%s1568_s13 + $0x70] sm:$0xff]   ;;  %v1350_v18 = vld [vmem:[%s1568_s13 + $0x38] sm:$0xff]  }
  0x20   : > { %v1358_v19 = vld [vmem:[%s1568_s13 + $0x78] sm:$0xff]   ;;  %p1368_p3 = por %p1367_p2, %p1366_p1 }
  0x22   : > { %p1369_p5 = pnand %p1368_p3, %p1362_p0 }
  0x25   : > { %1243 = vmatmul.mubr.msk.bf16.gmra.mrb[4].mxu0 %vm396_vm1, %v1346_v7 }
  0x26   : > { %1246 = vmatprep.mubr.msk.bf16.mxu0 %vm396_vm1, %v1347_v11  ;;  %1259 = vmatmul.mubr.msk.bf16.gmra.mrb[4].mxu1 %vm396_vm1, %v1354_v12 }
  0x27   : > { %1262 = vmatprep.mubr.msk.bf16.mxu1 %vm396_vm1, %v1355_v13 }
  0x2d   : > { %1247 = vmatmul.mubr.msk.bf16.gmra.mrb[8].mxu0 %vm396_vm1, %v1348_v14 }
  0x2e   : > { %1250 = vmatprep.mubr.msk.bf16.mxu0 %vm396_vm1, %v1349_v15  ;;  %1263 = vmatmul.mubr.msk.bf16.gmra.mrb[8].mxu1 %vm396_vm1, %v1356_v16 }
  0x2f   : > { %1266 = vmatprep.mubr.msk.bf16.mxu1 %vm396_vm1, %v1357_v17 }
  0x35   : > { %1251 = vmatmul.mubr.msk.bf16.gmra.mrb[12].mxu0 %vm396_vm1, %v1350_v18 }
  0x36   : > { %1267 = vmatmul.mubr.msk.bf16.gmra.mrb[12].mxu1 %vm396_vm1, %v1358_v19 }
  0xf0   : > { %v1240_v21 = vpop.f32.mrb[0].mxu0 }
  0xf1   : > { %v492_v22 = vadd.f32 %v1240_v21, %v1605_v20  ;;  %v483_v23 = vpop.f32.mrb[1].mxu0  ;;  %v1256_v31 = vpop.f32.mrb[0].mxu1 }
  0xf2   : > { %v484_v24 = vadd.f32 %v1605_v20, %v483_v23  ;;  %v1241_v25 = vpop.f32.mrb[2].mxu0  ;;  %v1616_v34 = vadd.f32 %v1256_v31, %v1605_v20  ;;  %v547_v35 = vpop.f32.mrb[1].mxu1 }
  0xf3   : > { %v495_v26 = vadd.f32 %v1241_v25, %v1605_v20  ;;  %v486_v27 = vpop.f32.mrb[3].mxu0  ;;  %v612_v29 = vmax.f32 %v492_v22, 0.0  ;;  %v1619_v37 = vadd.f32 %v1605_v20, %v547_v35  ;;  %v1257_v38 = vpop.f32.mrb[2].mxu1 }
  0xf4   : > { %v487_v28 = vadd.f32 %v1605_v20, %v486_v27  ;;  %v610_v32 = vmax.f32 %v484_v24, 0.0  ;;  %v628_v42 = vmax.f32 %v1616_v34, 0.0  ;;  %v1623_v43 = vadd.f32 %v1257_v38, %v1605_v20  ;;  %v550_v44 = vpop.f32.mrb[3].mxu1 }
  0xf5   : > { %v613_v30 = vmax.f32 %v495_v26, 0.0  ;;  %v626_v47 = vmax.f32 %v1619_v37, 0.0  ;;  %v1631_v48 = vadd.f32 %v1605_v20, %v550_v44 }
  0xf6   : > { %v611_v33 = vmax.f32 %v487_v28, 0.0  ;;  %v629_v52 = vmax.f32 %v1623_v43, 0.0 }
  0xf7   : > { %v1126_v36 = vpack.c.bf16 %v613_v30, %v612_v29  ;;  %v627_v55 = vmax.f32 %v1631_v48, 0.0 }
  0xf8   : > { %v1121_v39 = vpack.c.bf16 %v611_v33, %v610_v32  ;;  %v802_v40 = vadd.f32 %v611_v33, %v610_v32  ;;  %v1244_v41 = vpop.f32.mrb[4].mxu0  ;;  %v1166_v59 = vpack.c.bf16 %v629_v52, %v628_v42 }
  0xf9   : > { %1198 = vst [vmem:[%s1625_s26 + $0x8] sm:$0xff] %v1126_v36   ;;  %v508_v45 = vadd.f32 %v1244_v41, %v1605_v20  ;;  %v499_v46 = vpop.f32.mrb[5].mxu0  ;;  %v1161_v62 = vpack.c.bf16 %v627_v55, %v626_v47  ;;  %v1260_v63 = vpop.f32.mrb[4].mxu1 }
  0xfa   : > { %1122 = vst [vmem:[%s1625_s26] sm:$0xff] %v1121_v39   ;;  %v803_v49 = vadd.f32 %v802_v40, %v612_v29  ;;  %v500_v50 = vadd.f32 %v1605_v20, %v499_v46  ;;  %v1245_v51 = vpop.f32.mrb[6].mxu0  ;;  %1206 = vst [vmem:[%s1625_s26 + $0x48] sm:$0xff] %v1166_v59   ;;  %v1649_v2 = vadd.f32 %v1260_v63, %v1605_v20  ;;  %v563_v3 = vpop.f32.mrb[5].mxu1 }
  0xfb   : > { %v511_v53 = vadd.f32 %v1245_v51, %v1605_v20  ;;  %v502_v54 = vpop.f32.mrb[7].mxu0  ;;  %v616_v60 = vmax.f32 %v508_v45, 0.0  ;;  %1205 = vst [vmem:[%s1625_s26 + $0x40] sm:$0xff] %v1161_v62   ;;  %v1653_v5 = vadd.f32 %v1605_v20, %v563_v3  ;;  %v1261_v6 = vpop.f32.mrb[6].mxu1 }
  0xfc   : > { %v614_v56 = vmax.f32 %v500_v50, 0.0  ;;  %v804_v57 = vadd.f32 %v803_v49, %v613_v30  ;;  %v503_v58 = vadd.f32 %v1605_v20, %v502_v54  ;;  %v632_v10 = vmax.f32 %v1649_v2, 0.0  ;;  %v566_v12 = vpop.f32.mrb[7].mxu1 }
  0xfd   : > { %v617_v61 = vmax.f32 %v511_v53, 0.0  ;;  %v1657_v11 = vadd.f32 %v1261_v6, %v1605_v20  ;;  %v630_v15 = vmax.f32 %v1653_v5, 0.0  ;;  %v1663_v16 = vadd.f32 %v1605_v20, %v566_v12 }
  0xfe   : > { %v805_v0 = vadd.f32 %v804_v57, %v614_v56  ;;  %v615_v1 = vmax.f32 %v503_v58, 0.0 }
  0xff   : > { %v1136_v4 = vpack.c.bf16 %v617_v61, %v616_v60  ;;  %v633_v21 = vmax.f32 %v1657_v11, 0.0  ;;  %v631_v24 = vmax.f32 %v1663_v16, 0.0 }
 0x100   : > { %v1131_v7 = vpack.c.bf16 %v615_v1, %v614_v56  ;;  %v806_v8 = vadd.f32 %v805_v0, %v615_v1  ;;  %v1248_v9 = vpop.f32.mrb[8].mxu0 }
 0x101   : > { %1200 = vst [vmem:[%s1625_s26 + $0x18] sm:$0xff] %v1136_v4   ;;  %v524_v13 = vadd.f32 %v1248_v9, %v1605_v20  ;;  %v515_v14 = vpop.f32.mrb[9].mxu0  ;;  %v1176_v28 = vpack.c.bf16 %v633_v21, %v632_v10  ;;  %v1171_v31 = vpack.c.bf16 %v631_v24, %v630_v15  ;;  %v1264_v32 = vpop.f32.mrb[8].mxu1 }
 0x102   : > { %1199 = vst [vmem:[%s1625_s26 + $0x10] sm:$0xff] %v1131_v7   ;;  %v807_v17 = vadd.f32 %v806_v8, %v616_v60  ;;  %v516_v18 = vadd.f32 %v1605_v20, %v515_v14  ;;  %v1249_v19 = vpop.f32.mrb[10].mxu0  ;;  %v1681_v36 = vadd.f32 %v1264_v32, %v1605_v20  ;;  %v579_v38 = vpop.f32.mrb[9].mxu1 }
 0x103   : > { %v527_v22 = vadd.f32 %v1249_v19, %v1605_v20  ;;  %v518_v23 = vpop.f32.mrb[11].mxu0  ;;  %v620_v29 = vmax.f32 %v524_v13, 0.0  ;;  %1208 = vst [vmem:[%s1625_s26 + $0x58] sm:$0xff] %v1176_v28   ;;  %1207 = vst [vmem:[%s1625_s26 + $0x50] sm:$0xff] %v1171_v31   ;;  %v1685_v40 = vadd.f32 %v1605_v20, %v579_v38  ;;  %v1265_v41 = vpop.f32.mrb[10].mxu1 }
 0x104   : > { %v618_v25 = vmax.f32 %v516_v18, 0.0  ;;  %v808_v26 = vadd.f32 %v807_v17, %v617_v61  ;;  %v519_v27 = vadd.f32 %v1605_v20, %v518_v23  ;;  %v636_v49 = vmax.f32 %v1681_v36, 0.0  ;;  %v582_v51 = vpop.f32.mrb[11].mxu1 }
 0x105   : > { %v621_v30 = vmax.f32 %v527_v22, 0.0  ;;  %v1689_v50 = vadd.f32 %v1265_v41, %v1605_v20  ;;  %v634_v56 = vmax.f32 %v1685_v40, 0.0  ;;  %v1695_v57 = vadd.f32 %v1605_v20, %v582_v51 }
 0x106   : > { %v809_v33 = vadd.f32 %v808_v26, %v618_v25  ;;  %v619_v35 = vmax.f32 %v519_v27, 0.0 }
 0x107   : > { %v1146_v39 = vpack.c.bf16 %v621_v30, %v620_v29  ;;  %v637_v61 = vmax.f32 %v1689_v50, 0.0  ;;  %v635_v0 = vmax.f32 %v1695_v57, 0.0 }
 0x108   : > { %v1141_v44 = vpack.c.bf16 %v619_v35, %v618_v25  ;;  %v810_v45 = vadd.f32 %v809_v33, %v619_v35  ;;  %v1252_v46 = vpop.f32.mrb[12].mxu0 }
 0x109   : > { %1202 = vst [vmem:[%s1625_s26 + $0x28] sm:$0xff] %v1146_v39   ;;  %v540_v53 = vadd.f32 %v1252_v46, %v1605_v20  ;;  %v531_v54 = vpop.f32.mrb[13].mxu0  ;;  %v1186_v6 = vpack.c.bf16 %v637_v61, %v636_v49  ;;  %v1181_v9 = vpack.c.bf16 %v635_v0, %v634_v56  ;;  %v1268_v12 = vpop.f32.mrb[12].mxu1 }
 0x10a   : > { %1201 = vst [vmem:[%s1625_s26 + $0x20] sm:$0xff] %v1141_v44   ;;  %v811_v58 = vadd.f32 %v810_v45, %v620_v29  ;;  %v532_v59 = vadd.f32 %v1605_v20, %v531_v54  ;;  %v1253_v60 = vpop.f32.mrb[14].mxu0  ;;  %v1713_v17 = vadd.f32 %v1268_v12, %v1605_v20  ;;  %v595_v18 = vpop.f32.mrb[13].mxu1 }
 0x10b   : > { %v543_v62 = vadd.f32 %v1253_v60, %v1605_v20  ;;  %v534_v63 = vpop.f32.mrb[15].mxu0  ;;  %v624_v7 = vmax.f32 %v540_v53, 0.0  ;;  %1210 = vst [vmem:[%s1625_s26 + $0x68] sm:$0xff] %v1186_v6   ;;  %1209 = vst [vmem:[%s1625_s26 + $0x60] sm:$0xff] %v1181_v9   ;;  %v1717_v22 = vadd.f32 %v1605_v20, %v595_v18  ;;  %v1269_v23 = vpop.f32.mrb[14].mxu1 }
 0x10c   : > { %v622_v1 = vmax.f32 %v532_v59, 0.0  ;;  %v812_v3 = vadd.f32 %v811_v58, %v621_v30  ;;  %v535_v4 = vadd.f32 %v1605_v20, %v534_v63  ;;  %v640_v27 = vmax.f32 %v1713_v17, 0.0  ;;  %v598_v29 = vpop.f32.mrb[15].mxu1 }
 0x10d   : > { %v625_v8 = vmax.f32 %v543_v62, 0.0  ;;  %v1721_v28 = vadd.f32 %v1269_v23, %v1605_v20  ;;  %v638_v30 = vmax.f32 %v1717_v22, 0.0  ;;  %v599_v31 = vadd.f32 %v1605_v20, %v598_v29 }
 0x10e   : > { %v813_v13 = vadd.f32 %v812_v3, %v622_v1  ;;  %v623_v14 = vmax.f32 %v535_v4, 0.0 }
 0x10f   : > { %v1156_v19 = vpack.c.bf16 %v625_v8, %v624_v7  ;;  %v641_v33 = vmax.f32 %v1721_v28, 0.0  ;;  %v639_v35 = vmax.f32 %v599_v31, 0.0 }
 0x110   : > { %v1151_v25 = vpack.c.bf16 %v623_v14, %v622_v1  ;;  %v814_v26 = vadd.f32 %v813_v13, %v623_v14 }
 0x111   : > { %1204 = vst [vmem:[%s1625_s26 + $0x38] sm:$0xff] %v1156_v19   ;;  %v1196_v39 = vpack.c.bf16 %v641_v33, %v640_v27  ;;  %v1191_v20 = vpack.c.bf16 %v639_v35, %v638_v30 }
 0x112   : > { %1203 = vst [vmem:[%s1625_s26 + $0x30] sm:$0xff] %v1151_v25   ;;  %v815_v32 = vadd.f32 %v814_v26, %v624_v7 }
 0x113   : > { %1212 = vst [vmem:[%s1625_s26 + $0x78] sm:$0xff] %v1196_v39   ;;  %1211 = vst [vmem:[%s1625_s26 + $0x70] sm:$0xff] %v1191_v20  }
 0x114   : > { %v816_v38 = vadd.f32 %v815_v32, %v625_v8 }
 0x116   : > { %v817_v41 = vadd.f32 %v816_v38, %v626_v47 }
 0x118   : > { %v818_v44 = vadd.f32 %v817_v41, %v627_v55 }
 0x119   : > { %1372 = shalt.err (!%p1369_p5)
}
 0x11a   : > { %s1373_s13 = scalar_lea.hbm %s1733_s7, 2048  ;;  %s1377_s24 = scalar_lea.hbm %s1843_s3, 4096 }
 0x11b   : > { %p1374_p6 = scmp.ne.s32.totalorder %s1733_s7, %s1373_s13  ;;  %p1378_p10 = scmp.lt.u32.totalorder %s1733_s7, %s1843_s3 }
 0x11c   : > { %p1379_p11 = scmp.lt.u32.totalorder %s1377_s24, %s1373_s13  ;;  %p1381_p13 = scmp.lt.u32.totalorder %s1373_s13, %s1733_s7 }
 0x11d   : > { %p1375_p7 = pnand %p1374_p6, %p1540_p4 }
 0x11e   : > { %p1380_p12 = por %p1379_p11, %p1378_p10 }
 0x11f   : > { %p1376_p9 = pneg %p1375_p7 }
 0x120   : > { %p1382_p0 = por %p1381_p13, %p1380_p12 }
 0x122   : > { %p1383_p1 = pnand %p1382_p0, %p1376_p9 }
 0x124   : > { %1386 = shalt.err (!%p1383_p1)
}
 0x125   : > { %s1472_s5 = smov 64   ;;  %s1473_s6 = smov 4   ;;  %v819_v37 = vadd.f32 %v818_v44, %v628_v42 }
 0x126   : > { %1278 = dma.vmem_to_hbm [thread:$0]  (%p1540_p4), %s1735_s30, 2048, %s1733_s7, %s841_s8, %s1472_s5, %s1472_s5, %s1473_s6  }
 0x127   : > { %v820_v47 = vadd.f32 %v819_v37, %v629_v52  ;;  %s1082_s30 = sshll.u32 %s1461_s18, 4  ;;  %s241_s7 = scalar_lea.vmem [#allocation4], %s1608_s22 }
 0x128   : > { %s876_s8 = sshll.u32 %s241_s7, 4  ;;  %s1792_s11 = scalar_lea.hbm %s1844_s4, %s1082_s30  ;;  %s1794_s8 = int_to_ptr.vmem [resolvable:$true] %s876_s8 }
 0x129   : > { %v821_v48 = vadd.f32 %v820_v47, %v630_v15  ;;  %s846_s12 = scalar_lea.sflag [#allocation5], %s1608_s22  ;;  %s1387_s13 = scalar_lea.vmem %s1794_s8, 16 }
 0x12a   : > { %p1388_p2 = scmp.ne.s32.totalorder %s1794_s8, %s1387_s13  ;;  %s1474_s18 = smov [#allocation4]  }
 0x12b   : > { %v822_v55 = vadd.f32 %v821_v48, %v631_v24  ;;  %s1391_s14 = sshll.u32 %s1474_s18, 4  ;;  %s1392_s14 = int_to_ptr.vmem [resolvable:$false] %s1391_s14 }
 0x12c   : > { %p1389_p3 = pnand %p1388_p2, %p1540_p4  ;;  %s1393_s21 = scalar_lea.vmem %s1392_s14, 32 }
 0x12d   : > { %v823_v45 = vadd.f32 %v822_v55, %v632_v10  ;;  %p1394_p6 = scmp.lt.s32.totalorder %s1794_s8, %s1392_s14  ;;  %p1395_p7 = scmp.lt.s32.totalorder %s1393_s21, %s1387_s13 }
 0x12e   : > { %p1390_p5 = pneg %p1389_p3 }
 0x12f   : > { %v824_v46 = vadd.f32 %v823_v45, %v633_v21  ;;  %p1396_p9 = por %p1395_p7, %p1394_p6 }
 0x131   : > { %v825_v34 = vadd.f32 %v824_v46, %v634_v56  ;;  %p1397_p10 = pnand %p1396_p9, %p1390_p5 }
 0x133   : > { %v826_v42 = vadd.f32 %v825_v34, %v635_v0 }
 0x135   : > { %v827_v43 = vadd.f32 %v826_v42, %v636_v49 }
 0x137   : > { %v828_v52 = vadd.f32 %v827_v43, %v637_v61 }
 0x139   : > { %v829_v5 = vadd.f32 %v828_v52, %v638_v30 }
 0x13b   : > { %v830_v2 = vadd.f32 %v829_v5, %v639_v35 }
 0x13d   : > { %v831_v15 = vadd.f32 %v830_v2, %v640_v27 }
 0x13f   : > { %v832_v10 = vadd.f32 %v831_v15, %v641_v33 }
 0x141   : > { %v833_v11 = vrot.slane %v832_v10, 4 }
 0x143   : > { %v834_v16 = vadd.f32 %v833_v11, %v832_v10 }
 0x145   : > { %v835_v21 = vrot.slane %v834_v16, 2 }
 0x147   : > { %v836_v24 = vadd.f32 %v835_v21, %v834_v16 }
 0x149   : > { %v837_v40 = vrot.slane %v836_v24, 1 }
 0x14b   : > { %v838_v51 = vadd.f32 %v837_v40, %v836_v24 }
 0x14d   : > { %839 = vst [vmem:[%s241_s7] sm:$0x1] %v838_v51 }
 0x14e   : > { %1400 = shalt.err (!%p1397_p10)
}
 0x14f   : > { %s1401_s22 = scalar_lea.hbm %s1792_s11, 16  ;;  %s1405_s29 = scalar_lea.hbm %s1844_s4, 32 }
 0x150   : > { %p1402_p11 = scmp.ne.s32.totalorder %s1792_s11, %s1401_s22  ;;  %p1406_p0 = scmp.lt.u32.totalorder %s1792_s11, %s1844_s4 }
 0x151   : > { %p1407_p1 = scmp.lt.u32.totalorder %s1405_s29, %s1401_s22  ;;  %p1409_p3 = scmp.lt.u32.totalorder %s1401_s22, %s1792_s11 }
 0x152   : > { %p1403_p12 = pnand %p1402_p11, %p1540_p4 }
 0x153   : > { %p1408_p2 = por %p1407_p1, %p1406_p0 }
 0x154   : > { %p1404_p13 = pneg %p1403_p12 }
 0x155   : > { %p1410_p5 = por %p1409_p3, %p1408_p2 }
 0x157   : > { %p1411_p6 = pnand %p1410_p5, %p1404_p13 }
 0x159   : > { %1414 = shalt.err (!%p1411_p6)
}
 0x15a   : > { %1279 = dma.vmem_to_hbm [thread:$0]  (%p1540_p4), %s1794_s8, 16, %s1792_s11, %s846_s12  }
 0x15b PF: > { %p1289_p7 = scmp.ge.s32.totalorder %s1469_s20, 2  ;;  %s888_s30 = sand.u32 1, %s1449_s15  }
 0x15c   : > { %s889_s7 = scalar_lea.sflag [#allocation3], %s888_s30 }
 0x15d   : > { %p1283_p9 = pnand %p1289_p7, %p1547_p8 }
 0x15f   : > { %1440 = dma.done.wait (!%p1283_p9), %s889_s7, 2048  }
 0x160   : > { %1442 = vsyncadd (!%p1283_p9), %s889_s7, 4294965248  ;;  %s898_s9 = scalar_lea.sflag [#allocation5], %s888_s30 }
 0x161   : > { %1444 = dma.done.wait (!%p1283_p9), %s898_s9, 16  }
 0x162   : > { %1446 = vsyncadd (!%p1283_p9), %s898_s9, 4294967280  ;;  %s21_s20 = sadd.s32 1, %s1469_s20   ;;  %s1847_s15 = smov %s1453_s16 }
 0x163   : > { %p18_p10 = scmp.ge.s32.totalorder %s21_s20, 4   ;;  %s1848_s16 = smov %s1457_s17 }
 0x164   : > { %s1849_s17 = smov %s1553_s28  ;;  %s1850_s18 = smov %s1465_s19 }
 0x165   : > { %s1851_s19 = smov %s1853_s23  ;;  %20 = sbr.rel (!%p18_p10) target bundleno = 6 (0x6), region = 90 }
 0x16c   :  { %902 = vsyncpa [#allocation3], 1 }
 0x16d   :  { %904 = vsyncpa [#allocation3 + $0x1], 1 }
 0x16e   :  { %905 = vsyncpa [#allocation5], 1 }
 0x16f   :  { %907 = vsyncpa [#allocation5 + $0x1], 1 }

</bundles_post_ra>
